<compile_context>
chip_gen: v7x
topology: tpu7x:2x2x1
jax: 0.10.0
libtpu: 0.0.40
codegen_flags: <defaults>
</compile_context>

<pallas_src>
import functools

import numpy as np
import jax
import jax.numpy as jnp
from jax import lax
from jax.experimental import pallas as pl
from jax.experimental.pallas import tpu as pltpu

LANES = 1024          # lane-dense last dim (multiple of 128 -> unmasked vst)
SUBLANES = 8
MAX_TILE_ROWS = 512   # 512 x 1024 f32 = 2 MiB per tile
N_OPTIONS = 8         # NLTransform.nOptions


def _u32(v):
    return jnp.uint32(v)


def _compressor_kernel(x_ref, xdec_ref, y_ref, *,
                       mu, inv_mu, log1p_mu, inv_log1p_mu, noise_scale, seed):
    """Elementwise hot path: encode + quantization noise + clamp + decode.

    All nbits-derived scalars are baked in as Python-float constants
    (multiplies by precomputed reciprocals instead of divides).
    """
    shape = x_ref.shape
    x = x_ref[...]

    # NLTransform.encode (mu-law companding)
    enc = jnp.log(1.0 + mu * x) * inv_log1p_mu

    # qnoise.sample(x.shape) in [-0.5, 0.5), scaled by 1 / (1 << (nbits - 1)).
    # Stateless counter-based hash: unique (tile, row, col) -> uniform bits.
    pid = pl.program_id(0).astype(jnp.uint32)
    r = lax.broadcasted_iota(jnp.int32, shape, 0).astype(jnp.uint32)
    c = lax.broadcasted_iota(jnp.int32, shape, 1).astype(jnp.uint32)
    h = (r * _u32(0x9E3779B1)) ^ (c * _u32(0x85EBCA77)) \
        ^ (pid * _u32(0xC2B2AE3D)) ^ _u32(seed)
    # murmur3 fmix32 finalizer
    h = h ^ (h >> 16)
    h = h * _u32(0x85EBCA6B)
    h = h ^ (h >> 13)
    h = h * _u32(0xC2B2AE35)
    h = h ^ (h >> 16)
    u = (h >> 8).astype(jnp.float32) * jnp.float32(1.0 / (1 << 24)) - 0.5

    enc = enc + u * noise_scale

    # y = clamp(code, 0, 1)  (clamp is applied post-encode, as in the module)
    y = jnp.clip(enc, 0.0, 1.0)

    # NLTransform.decode (inverse companding)
    dec = (jnp.exp(y * log1p_mu) - 1.0) * inv_mu

    y_ref[...] = y
    xdec_ref[...] = dec


def compressor_forward(x, nbits, seed=0):
    """Pallas implementation of CompressorNet.forward.

    x     : float32 NCHW array (values assumed in [0, 1], like image data)
    nbits : python int in [1, N_OPTIONS]
    Returns (x_decoded, y_code, nbits) matching the PyTorch module.
    """
    orig_shape = x.shape
    n = int(np.prod(orig_shape))

    # Lane-dense slab (rows, 1024); pad only when required.
    rows_needed = -(-n // LANES)
    if rows_needed <= MAX_TILE_ROWS:
        tile_rows = max(SUBLANES,
                        ((rows_needed + SUBLANES - 1) // SUBLANES) * SUBLANES)
        rows = tile_rows
    else:
        tile_rows = MAX_TILE_ROWS
        rows = ((rows_needed + tile_rows - 1) // tile_rows) * tile_rows
    padded = rows * LANES

    flat = x.reshape(-1).astype(jnp.float32)
    if padded != n:
        flat = jnp.pad(flat, (0, padded - n))
    flat2d = flat.reshape(rows, LANES)

    # Scalar parameters derived from nbits (host-side python int -> constants).
    mu = float((1 << nbits) - 1)
    log1p_mu = float(np.log1p(mu))
    noise_scale = float(2.0 ** (-(nbits - 1)))  # == 1 / (1 << (nbits - 1))

    kernel = functools.partial(
        _compressor_kernel,
        mu=mu, inv_mu=1.0 / mu,
        log1p_mu=log1p_mu, inv_log1p_mu=1.0 / log1p_mu,
        noise_scale=noise_scale,
        seed=int(seed) & 0xFFFFFFFF)

    grid = (rows // tile_rows,)
    block = (tile_rows, LANES)
    tile_map = lambda i: (i, 0)

    xdec2d, y2d = pl.pallas_call(
        kernel,
        out_shape=(
            jax.ShapeDtypeStruct((rows, LANES), jnp.float32),
            jax.ShapeDtypeStruct((rows, LANES), jnp.float32),
        ),
        grid=grid,
        in_specs=[pl.BlockSpec(block, tile_map)],
        out_specs=(
            pl.BlockSpec(block, tile_map),
            pl.BlockSpec(block, tile_map),
        ),
        compiler_params=pltpu.CompilerParams(
            # Noise is stateless per element -> grid order independent ->
            # shard the single axis across TensorCores on v7x.
            dimension_semantics=("parallel",),
        ),
    )(flat2d)

    if padded != n:
        x_dec = xdec2d.reshape(-1)[:n].reshape(orig_shape)
        y_code = y2d.reshape(-1)[:n].reshape(orig_shape)
    else:
        x_dec = xdec2d.reshape(orig_shape)
        y_code = y2d.reshape(orig_shape)
    return x_dec, y_code, nbits


def _reference_encode(x, nbits):
    """Pure-JAX noise-free encode, used only for sanity bounds."""
    mu = float((1 << nbits) - 1)
    return jnp.log1p(mu * x) / jnp.log1p(mu)


if __name__ == "__main__":
    key = jax.random.PRNGKey(0)
    # NCHW input, values in [0, 1] (image-like data for the compressor).
    x = jax.random.uniform(key, (2, 4, 16, 16), dtype=jnp.float32)

    # nbits = np.random.randint(nOptions) + 1, drawn deterministically.
    rng = np.random.default_rng(0)
    nbits = int(rng.integers(N_OPTIONS)) + 1

    x_dec, y_code, nb = compressor_forward(x, nbits, seed=0)
    jax.block_until_ready((x_dec, y_code))

    # Sanity checks: y in [0, 1]; clamp(encode(x)) and y differ by at most
    # the quantization-noise budget; shapes preserved.
    assert y_code.shape == x.shape and x_dec.shape == x.shape
    assert float(jnp.min(y_code)) >= 0.0 and float(jnp.max(y_code)) <= 1.0
    enc_ref = jnp.clip(_reference_encode(x, nbits), 0.0, 1.0)
    noise_budget = 0.5 * (2.0 ** (-(nbits - 1)))
    assert float(jnp.max(jnp.abs(enc_ref - y_code))) <= noise_budget + 1e-5

    print("KERNEL_OK")
</pallas_src>

<mosaic_0001>
module attributes {stable_mosaic.version = 11 : i64} {
  func.func @_compressor_kernel(%arg0: i32, %arg1: memref<8x1024xf32, #tpu.memory_space<vmem>>, %arg2: memref<8x1024xf32, #tpu.memory_space<vmem>>, %arg3: memref<8x1024xf32, #tpu.memory_space<vmem>>) attributes {dimension_semantics = [#tpu.dimension_semantics<parallel>], iteration_bounds = array<i64: 1>, scalar_prefetch = 0 : i64, scratch_operands = 0 : i64, tpu.core_type = #tpu.core_type<tc>, window_params = [{transform_indices = @transform_0, window_bounds = array<i64: 8, 1024>}, {transform_indices = @transform_1, window_bounds = array<i64: 8, 1024>}, {transform_indices = @transform_2, window_bounds = array<i64: 8, 1024>}]} {
    %c0 = arith.constant 0 : index
    %c0_0 = arith.constant 0 : index
    %0 = vector.load %arg1[%c0, %c0_0] : memref<8x1024xf32, #tpu.memory_space<vmem>>, vector<8x1024xf32>
    %cst = arith.constant 1.270000e+02 : f32
    %1 = vector.broadcast %cst : f32 to vector<8x1024xf32>
    %2 = arith.mulf %1, %0 : vector<8x1024xf32>
    %cst_1 = arith.constant 1.000000e+00 : f32
    %3 = vector.broadcast %cst_1 : f32 to vector<8x1024xf32>
    %4 = arith.addf %3, %2 : vector<8x1024xf32>
    %5 = math.log %4 : vector<8x1024xf32>
    %cst_2 = arith.constant 0.206099287 : f32
    %6 = vector.broadcast %cst_2 : f32 to vector<8x1024xf32>
    %7 = arith.mulf %5, %6 : vector<8x1024xf32>
    %8 = tpu.iota {dimensions = array<i32: 0>} : vector<8x1024xi32>
    %9 = tpu.iota {dimensions = array<i32: 1>} : vector<8x1024xi32>
    %c-1640531535_i32 = arith.constant -1640531535 : i32
    %10 = vector.broadcast %c-1640531535_i32 : i32 to vector<8x1024xi32>
    %11 = arith.muli %8, %10 : vector<8x1024xi32>
    %c-2048144777_i32 = arith.constant -2048144777 : i32
    %12 = vector.broadcast %c-2048144777_i32 : i32 to vector<8x1024xi32>
    %13 = arith.muli %9, %12 : vector<8x1024xi32>
    %14 = arith.xori %11, %13 : vector<8x1024xi32>
    %c-1028477379_i32 = arith.constant -1028477379 : i32
    %15 = arith.muli %arg0, %c-1028477379_i32 : i32
    %16 = vector.broadcast %15 : i32 to vector<8x1024xi32>
    %17 = arith.xori %14, %16 : vector<8x1024xi32>
    %c0_i32 = arith.constant 0 : i32
    %18 = vector.broadcast %c0_i32 : i32 to vector<8x1024xi32>
    %19 = arith.xori %17, %18 : vector<8x1024xi32>
    %c16_i32 = arith.constant 16 : i32
    %20 = vector.broadcast %c16_i32 : i32 to vector<8x1024xi32>
    %21 = arith.shrui %19, %20 : vector<8x1024xi32>
    %22 = arith.xori %19, %21 : vector<8x1024xi32>
    %c-2048144789_i32 = arith.constant -2048144789 : i32
    %23 = vector.broadcast %c-2048144789_i32 : i32 to vector<8x1024xi32>
    %24 = arith.muli %22, %23 : vector<8x1024xi32>
    %c13_i32 = arith.constant 13 : i32
    %25 = vector.broadcast %c13_i32 : i32 to vector<8x1024xi32>
    %26 = arith.shrui %24, %25 : vector<8x1024xi32>
    %27 = arith.xori %24, %26 : vector<8x1024xi32>
    %c-1028477387_i32 = arith.constant -1028477387 : i32
    %28 = vector.broadcast %c-1028477387_i32 : i32 to vector<8x1024xi32>
    %29 = arith.muli %27, %28 : vector<8x1024xi32>
    %c16_i32_3 = arith.constant 16 : i32
    %30 = vector.broadcast %c16_i32_3 : i32 to vector<8x1024xi32>
    %31 = arith.shrui %29, %30 : vector<8x1024xi32>
    %32 = arith.xori %29, %31 : vector<8x1024xi32>
    %c8_i32 = arith.constant 8 : i32
    %33 = vector.broadcast %c8_i32 : i32 to vector<8x1024xi32>
    %34 = arith.shrui %32, %33 : vector<8x1024xi32>
    %35 = arith.uitofp %34 : vector<8x1024xi32> to vector<8x1024xf32>
    %cst_4 = arith.constant 5.96046448E-8 : f32
    %36 = vector.broadcast %cst_4 : f32 to vector<8x1024xf32>
    %37 = arith.mulf %35, %36 : vector<8x1024xf32>
    %cst_5 = arith.constant 5.000000e-01 : f32
    %38 = vector.broadcast %cst_5 : f32 to vector<8x1024xf32>
    %39 = arith.subf %37, %38 : vector<8x1024xf32>
    %cst_6 = arith.constant 1.562500e-02 : f32
    %40 = vector.broadcast %cst_6 : f32 to vector<8x1024xf32>
    %41 = arith.mulf %39, %40 : vector<8x1024xf32>
    %42 = arith.addf %7, %41 : vector<8x1024xf32>
    %cst_7 = arith.constant 0.000000e+00 : f32
    %cst_8 = arith.constant 1.000000e+00 : f32
    %43 = vector.broadcast %cst_7 : f32 to vector<8x1024xf32>
    %44 = arith.maximumf %43, %42 : vector<8x1024xf32>
    %45 = vector.broadcast %cst_8 : f32 to vector<8x1024xf32>
    %46 = arith.minimumf %45, %44 : vector<8x1024xf32>
    %cst_9 = arith.constant 4.85203028 : f32
    %47 = vector.broadcast %cst_9 : f32 to vector<8x1024xf32>
    %48 = arith.mulf %46, %47 : vector<8x1024xf32>
    %49 = math.exp %48 : vector<8x1024xf32>
    %cst_10 = arith.constant 1.000000e+00 : f32
    %50 = vector.broadcast %cst_10 : f32 to vector<8x1024xf32>
    %51 = arith.subf %49, %50 : vector<8x1024xf32>
    %cst_11 = arith.constant 0.00787401571 : f32
    %52 = vector.broadcast %cst_11 : f32 to vector<8x1024xf32>
    %53 = arith.mulf %51, %52 : vector<8x1024xf32>
    %c0_12 = arith.constant 0 : index
    %c0_13 = arith.constant 0 : index
    %54 = vector.load %arg3[%c0_12, %c0_13] : memref<8x1024xf32, #tpu.memory_space<vmem>>, vector<8x1024xf32>
    tpu.vector_store %arg3[%c0_12, %c0_13], %46 {strides = array<i32>} : memref<8x1024xf32, #tpu.memory_space<vmem>>, vector<8x1024xf32>,
    %c0_14 = arith.constant 0 : index
    %c0_15 = arith.constant 0 : index
    %55 = vector.load %arg2[%c0_14, %c0_15] : memref<8x1024xf32, #tpu.memory_space<vmem>>, vector<8x1024xf32>
    tpu.vector_store %arg2[%c0_14, %c0_15], %53 {strides = array<i32>} : memref<8x1024xf32, #tpu.memory_space<vmem>>, vector<8x1024xf32>,
    return
  }
  func.func @transform_0(%arg0: i32) -> (i32, i32) {
    %c0_i32 = arith.constant 0 : i32
    %c0_i32_0 = arith.constant 0 : i32
    return %arg0, %c0_i32 : i32, i32
  }
  func.func @transform_1(%arg0: i32) -> (i32, i32) {
    %c0_i32 = arith.constant 0 : i32
    %c0_i32_0 = arith.constant 0 : i32
    return %arg0, %c0_i32 : i32, i32
  }
  func.func @transform_2(%arg0: i32) -> (i32, i32) {
    %c0_i32 = arith.constant 0 : i32
    %c0_i32_0 = arith.constant 0 : i32
    return %arg0, %c0_i32 : i32, i32
  }
}

</mosaic_0001>

<bundles_post_ra>
// kernel: tpu_custom_call.1
= control target key start
LH: loop header
LB: loop body
LE: loop exit
PB: predicated region body
PF: predicated region fallthrough
CT: control target
= control target key end

     0   :  { %8 = vsyncpa [#allocation3], 0  ;;  %s572_s0 = inlined_call_operand.hbm [shape: f32[8,1024], index: 0, kind: input, shape index: {}]   ;;  %s573_s1 = inlined_call_operand.hbm [shape: f32[8,1024], index: 1, kind: output, shape index: {0}]   ;;  %s574_s2 = inlined_call_operand.hbm [shape: f32[8,1024], index: 2, kind: output, shape index: {1}]  }
   0x1   :  { %9 = vsyncpa [#allocation4], 0 }
   0x2   :  { %10 = vsyncpa [#allocation7], 0  ;;  %s486_s9 = smov [#allocation2]   ;;  %s414_s13 = scalar_lea.hbm %s572_s0, 1024 }
   0x3   :  { %s17_s10 = sshll.u32 %s486_s9, 4  ;;  %p415_p0 = scmp.ne.s32.totalorder %s572_s0, %s414_s13  ;;  %s18_s10 = int_to_ptr.vmem [resolvable:$true] %s17_s10 }
   0x4   :  { %p418_p1 = scmp.lt.u32.totalorder %s414_s13, %s572_s0 }
   0x6   :  { %p420_p2 = pnand %p418_p1, %p415_p0 }
   0x8   :  { %423 = shalt.err (!%p420_p2)
}
   0x9   :  { %s424_s18 = scalar_lea.vmem %s18_s10, 1024  ;;  %p429_p4 = scmp.lt.s32.totalorder %s18_s10, %s18_s10 }
   0xa   :  { %p425_p3 = scmp.ne.s32.totalorder %s18_s10, %s424_s18  ;;  %p430_p5 = scmp.lt.s32.totalorder %s424_s18, %s424_s18 }
   0xc   :  { %p431_p6 = por %p430_p5, %p429_p4 }
   0xe   :  { %p432_p7 = pnand %p431_p6, %p425_p3 }
  0x10   :  { %435 = shalt.err (!%p432_p7)
}
  0x11   :  { %20 = dma.hbm_to_vmem [thread:$0]  %s572_s0, 1024, %s18_s10, [#allocation3]  }
  0x12   :  { %480 = dma.done.wait [#allocation3], 1024  }
  0x13   :  { %481 = vsyncadd [#allocation3], 4294966272  ;;  %v72_v0 = vlaneseq  ;;  %v24_v11 = vld [vmem:[#allocation2] sm:$0xff]  ;;  %v25_v12 = vld [vmem:[#allocation2 + $0x8] sm:$0xff]  ;;  %s487_s0 = smov [#allocation6]  }
  0x14   :  { %v26_v13 = vld [vmem:[#allocation2 + $0x10] sm:$0xff]  ;;  %v32_v15 = vmul.f32 127.0, %v24_v11  ;;  %v27_v18 = vld [vmem:[#allocation2 + $0x18] sm:$0xff]  ;;  %v33_v19 = vmul.f32 127.0, %v25_v12  ;;  %v28_v36 = vld [vmem:[#allocation2 + $0x20] sm:$0xff]  ;;  %s350_s21 = sshll.u32 %s487_s0, 4  ;;  %s351_s21 = int_to_ptr.vmem [resolvable:$true] %s350_s21 }
  0x15   :  { %v73_v1 = vshrl.u32 %v72_v0, 7  ;;  %v516_v2 = vand.u32 127, %v72_v0  ;;  %v34_v26 = vmul.f32 127.0, %v26_v13  ;;  %v35_v28 = vmul.f32 127.0, %v27_v18  ;;  %v29_v38 = vld [vmem:[#allocation2 + $0x28] sm:$0xff]  ;;  %v30_v46 = vld [vmem:[#allocation2 + $0x30] sm:$0xff]  ;;  %p441_p9 = scmp.lt.s32.totalorder %s351_s21, %s351_s21 }
  0x16   :  { %v40_v23 = vadd.f32 1.0, %v32_v15  ;;  %v41_v33 = vadd.f32 1.0, %v33_v19  ;;  %v36_v49 = vmul.f32 127.0, %v28_v36  ;;  %v37_v50 = vmul.f32 127.0, %v29_v38  ;;  %s436_s22 = scalar_lea.vmem %s351_s21, 1024 }
  0x17   :  { %v518_v3 = vmul.u32 2654435761, %v73_v1  ;;  %v84_v4 = vmul.u32 2246822519, %v516_v2  ;;  %v76_v5 = vadd.s32 128, %v516_v2  ;;  %v77_v6 = vadd.s32 256, %v516_v2  ;;  %p437_p8 = scmp.ne.s32.totalorder %s351_s21, %s436_s22  ;;  %p442_p10 = scmp.lt.s32.totalorder %s436_s22, %s436_s22 }
  0x18   :  { %v78_v7 = vadd.s32 384, %v516_v2  ;;  %v79_v22 = vadd.s32 512, %v516_v2  ;;  %v80_v32 = vadd.s32 640, %v516_v2  ;;  %382 = vlog2.f32 %v40_v23 }
  0x19   :  { %v92_v8 = vxor.u32 %v84_v4, %v518_v3  ;;  %v85_v9 = vmul.u32 2246822519, %v76_v5  ;;  %v86_v10 = vmul.u32 2246822519, %v77_v6  ;;  %v42_v41 = vadd.f32 1.0, %v34_v26  ;;  %p443_p11 = por %p442_p10, %p441_p9 }
  0x1a   :  { %v87_v14 = vmul.u32 2246822519, %v78_v7  ;;  %v88_v37 = vmul.u32 2246822519, %v79_v22  ;;  %v43_v43 = vadd.f32 1.0, %v35_v28  ;;  %384 = vlog2.f32 %v41_v33 }
  0x1b   :  { %v110_v16 = vshrl.u32 %v92_v8, 16  ;;  %v93_v17 = vxor.u32 %v85_v9, %v518_v3  ;;  %v94_v20 = vxor.u32 %v86_v10, %v518_v3  ;;  %v89_v54 = vmul.u32 2246822519, %v80_v32  ;;  %p444_p12 = pnand %p443_p11, %p437_p8 }
  0x1c   :  { %v95_v21 = vxor.u32 %v87_v14, %v518_v3  ;;  %v96_v45 = vxor.u32 %v88_v37, %v518_v3  ;;  %v38_v57 = vmul.f32 127.0, %v30_v46  ;;  %386 = vlog2.f32 %v42_v41 }
  0x1d   :  { %v118_v24 = vxor.u32 %v110_v16, %v92_v8  ;;  %v111_v25 = vshrl.u32 %v93_v17, 16  ;;  %v112_v27 = vshrl.u32 %v94_v20, 16  ;;  %v44_v63 = vadd.f32 1.0, %v36_v49 }
  0x1e   :  { %v113_v29 = vshrl.u32 %v95_v21, 16  ;;  %v114_v53 = vshrl.u32 %v96_v45, 16  ;;  %v45_v4 = vadd.f32 1.0, %v37_v50  ;;  %v97_v5 = vxor.u32 %v89_v54, %v518_v3 }
  0x1f   :  { %v126_v30 = vmul.u32 2246822507, %v118_v24  ;;  %v119_v31 = vxor.u32 %v111_v25, %v93_v17  ;;  %v120_v34 = vxor.u32 %v112_v27, %v94_v20  ;;  %388 = vlog2.f32 %v43_v43 }
  0x20   :  { %v121_v35 = vxor.u32 %v113_v29, %v95_v21  ;;  %v122_v60 = vxor.u32 %v114_v53, %v96_v45  ;;  %v46_v8 = vadd.f32 1.0, %v38_v57  ;;  %v533_v12 = vadd.s32 768, %v516_v2 }
  0x21   :  { %v134_v39 = vshrl.u32 %v126_v30, 13  ;;  %v127_v40 = vmul.u32 2246822507, %v119_v31  ;;  %v128_v42 = vmul.u32 2246822507, %v120_v34  ;;  %390 = vlog2.f32 %v44_v63 }
  0x22   :  { %v129_v44 = vmul.u32 2246822507, %v121_v35  ;;  %v130_v11 = vmul.u32 2246822507, %v122_v60  ;;  %v383_v13 = vpop.eup %382  ;;  %v536_v16 = vadd.s32 896, %v516_v2  ;;  %392 = vlog2.f32 %v45_v4 }
  0x23   :  { %v142_v47 = vxor.u32 %v134_v39, %v126_v30  ;;  %v135_v48 = vshrl.u32 %v127_v40, 13  ;;  %v136_v51 = vshrl.u32 %v128_v42, 13  ;;  %v115_v19 = vshrl.u32 %v97_v5, 16 }
  0x24   :  { %v137_v52 = vshrl.u32 %v129_v44, 13  ;;  %394 = vlog2.f32 %v46_v8  ;;  %v49_v23 = vmul.f32 0.6931472, %v383_v13  ;;  %v138_v26 = vshrl.u32 %v130_v11, 13  ;;  %v385_v27 = vpop.eup %384 }
  0x25   :  { %v150_v55 = vmul.u32 3266489909, %v142_v47  ;;  %v143_v56 = vxor.u32 %v135_v48, %v127_v40  ;;  %v144_v58 = vxor.u32 %v136_v51, %v128_v42  ;;  %v123_v34 = vxor.u32 %v115_v19, %v97_v5 }
  0x26   :  { %v145_v59 = vxor.u32 %v137_v52, %v129_v44  ;;  %v387_v35 = vpop.eup %386  ;;  %v51_v40 = vmul.f32 0.6931472, %v385_v27  ;;  %v146_v48 = vxor.u32 %v138_v26, %v130_v11  ;;  %v64_v49 = vmul.f32 0.20609929, %v49_v23 }
  0x27   :  { %v158_v61 = vshrl.u32 %v150_v55, 16  ;;  %v151_v62 = vmul.u32 3266489909, %v143_v56  ;;  %v152_v0 = vmul.u32 3266489909, %v144_v58 }
  0x28   :  { %v153_v1 = vmul.u32 3266489909, %v145_v59  ;;  %v53_v50 = vmul.f32 0.6931472, %v387_v35  ;;  %v154_v56 = vmul.u32 3266489909, %v146_v48 }
  0x29   :  { %v166_v6 = vxor.u32 %v158_v61, %v150_v55  ;;  %v159_v7 = vshrl.u32 %v151_v62, 16  ;;  %v160_v9 = vshrl.u32 %v152_v0, 16  ;;  %v389_v44 = vpop.eup %388  ;;  %v131_v57 = vmul.u32 2246822507, %v123_v34 }
  0x2a   :  { %v161_v10 = vshrl.u32 %v153_v1, 16  ;;  %v65_v59 = vmul.f32 0.20609929, %v51_v40  ;;  %v55_v61 = vmul.f32 0.6931472, %v389_v44  ;;  %v162_v4 = vshrl.u32 %v154_v56, 16 }
  0x2b   :  { %v174_v14 = vshrl.u32 %v166_v6, 8  ;;  %v167_v15 = vxor.u32 %v159_v7, %v151_v62  ;;  %v168_v17 = vxor.u32 %v160_v9, %v152_v0  ;;  %v391_v53 = vpop.eup %390  ;;  %v139_v5 = vshrl.u32 %v131_v57, 13 }
  0x2c   :  { %v169_v18 = vxor.u32 %v161_v10, %v153_v1  ;;  %v538_v58 = vpop.eup %392  ;;  %v66_v6 = vmul.f32 0.20609929, %v53_v50  ;;  %v90_v9 = vmul.u32 2246822519, %v533_v12  ;;  %v170_v13 = vxor.u32 %v162_v4, %v154_v56 }
  0x2d   :  { %v182_v20 = vshrl.u32 %v174_v14, 16  ;;  %v183_v21 = vand.u32 65535, %v174_v14  ;;  %v175_v22 = vshrl.u32 %v167_v15, 8  ;;  %v176_v24 = vshrl.u32 %v168_v17, 8 }
  0x2e   :  { %v177_v25 = vshrl.u32 %v169_v18, 8  ;;  %v540_v63 = vpop.eup %394  ;;  %v147_v14 = vxor.u32 %v139_v5, %v131_v57  ;;  %v67_v17 = vmul.f32 0.20609929, %v55_v61  ;;  %v98_v19 = vxor.u32 %v90_v9, %v518_v3 }
  0x2f   :  { %v184_v28 = vcvt.s32.f32 %v182_v20  ;;  %v186_v29 = vcvt.s32.f32 %v183_v21  ;;  %v188_v30 = vshrl.u32 %v175_v22, 16  ;;  %v189_v31 = vand.u32 65535, %v175_v22 }
  0x30   :  { %v194_v32 = vshrl.u32 %v176_v24, 16  ;;  %v195_v2 = vand.u32 65535, %v176_v24  ;;  %v200_v33 = vshrl.u32 %v177_v25, 16  ;;  %v201_v39 = vand.u32 65535, %v177_v25 }
  0x31   :  { %v185_v36 = vmul.f32 65536.0, %v184_v28  ;;  %v190_v37 = vcvt.s32.f32 %v188_v30  ;;  %v192_v38 = vcvt.s32.f32 %v189_v31  ;;  %v178_v22 = vshrl.u32 %v170_v13, 8 }
  0x32   :  { %v196_v41 = vcvt.s32.f32 %v194_v32  ;;  %v198_v42 = vcvt.s32.f32 %v195_v2  ;;  %v202_v43 = vcvt.s32.f32 %v200_v33  ;;  %v204_v47 = vcvt.s32.f32 %v201_v39 }
  0x33   :  { %v187_v45 = vadd.f32 %v186_v29, %v185_v36  ;;  %v191_v46 = vmul.f32 65536.0, %v190_v37  ;;  %v155_v23 = vmul.u32 3266489909, %v147_v14  ;;  %v57_v26 = vmul.f32 0.6931472, %v391_v53 }
  0x34   :  { %v197_v51 = vmul.f32 65536.0, %v196_v41  ;;  %v203_v52 = vmul.f32 65536.0, %v202_v43  ;;  %v116_v27 = vshrl.u32 %v98_v19, 16  ;;  %v206_v12 = vshrl.u32 %v178_v22, 16 }
  0x35   :  { %v230_v54 = vmul.f32 5.9604645e-08, %v187_v45  ;;  %v193_v55 = vadd.f32 %v192_v38, %v191_v46  ;;  %v207_v30 = vand.u32 65535, %v178_v22  ;;  %v163_v2 = vshrl.u32 %v155_v23, 16 }
  0x36   :  { %v199_v60 = vadd.f32 %v198_v42, %v197_v51  ;;  %v205_v62 = vadd.f32 %v204_v47, %v203_v52  ;;  %v124_v33 = vxor.u32 %v116_v27, %v98_v19  ;;  %v208_v36 = vcvt.s32.f32 %v206_v12 }
  0x37   :  { %v363_v0 = vadd.f32 -0.5, %v230_v54  ;;  %v231_v1 = vmul.f32 5.9604645e-08, %v193_v55  ;;  %v210_v37 = vcvt.s32.f32 %v207_v30  ;;  %v171_v40 = vxor.u32 %v163_v2, %v155_v23 }
  0x38   :  { %v232_v7 = vmul.f32 5.9604645e-08, %v199_v60  ;;  %v233_v8 = vmul.f32 5.9604645e-08, %v205_v62  ;;  %v132_v41 = vmul.u32 2246822507, %v124_v33  ;;  %v209_v44 = vmul.f32 65536.0, %v208_v36 }
  0x39   :  { %v246_v10 = vmul.f32 0.015625, %v363_v0  ;;  %v364_v11 = vadd.f32 -0.5, %v231_v1  ;;  %v91_v45 = vmul.u32 2246822519, %v536_v16  ;;  %v179_v48 = vshrl.u32 %v171_v40, 8 }
  0x3a   :  { %v365_v15 = vadd.f32 -0.5, %v232_v7  ;;  %v366_v18 = vadd.f32 -0.5, %v233_v8  ;;  %v211_v52 = vadd.f32 %v210_v37, %v209_v44  ;;  %v68_v4 = vmul.f32 0.20609929, %v57_v26  ;;  %v31_v7 = vld [vmem:[#allocation2 + $0x38] sm:$0xff] }
  0x3b   :  { %v254_v20 = vadd.f32 %v246_v10, %v64_v49  ;;  %v247_v21 = vmul.f32 0.015625, %v364_v11  ;;  %v140_v49 = vshrl.u32 %v132_v41, 13  ;;  %v99_v53 = vxor.u32 %v91_v45, %v518_v3 }
  0x3c   :  { %v248_v24 = vmul.f32 0.015625, %v365_v15  ;;  %v249_v25 = vmul.f32 0.015625, %v366_v18  ;;  %v212_v56 = vshrl.u32 %v179_v48, 16  ;;  %v213_v57 = vand.u32 65535, %v179_v48 }
  0x3d   :  { %v262_v28 = vmax.f32 %v254_v20, 0.0  ;;  %v255_v29 = vadd.f32 %v247_v21, %v65_v59  ;;  %v234_v60 = vmul.f32 5.9604645e-08, %v211_v52  ;;  %v148_v16 = vxor.u32 %v140_v49, %v132_v41 }
  0x3e   :  { %v256_v31 = vadd.f32 %v248_v24, %v66_v6  ;;  %v257_v32 = vadd.f32 %v249_v25, %v67_v17  ;;  %v214_v0 = vcvt.s32.f32 %v212_v56  ;;  %v216_v1 = vcvt.s32.f32 %v213_v57 }
  0x3f   :  { %v270_v34 = vmin.f32 %v262_v28, 1.0  ;;  %v263_v35 = vmax.f32 %v255_v29, 0.0  ;;  %v367_v5 = vadd.f32 -0.5, %v234_v60  ;;  %v156_v6 = vmul.u32 3266489909, %v148_v16 }
  0x40   :  { %v264_v38 = vmax.f32 %v256_v31, 0.0  ;;  %v265_v39 = vmax.f32 %v257_v32, 0.0  ;;  %v215_v3 = vmul.f32 65536.0, %v214_v0  ;;  %v117_v8 = vshrl.u32 %v99_v53, 16 }
  0x41   :  { %v278_v42 = vmul.f32 4.8520303, %v270_v34  ;;  %318 = vst [vmem:[#allocation6] sm:$0xff] %v270_v34  ;;  %v271_v43 = vmin.f32 %v263_v35, 1.0  ;;  %v250_v9 = vmul.f32 0.015625, %v367_v5  ;;  %v164_v10 = vshrl.u32 %v156_v6, 16 }
  0x42   :  { %v272_v46 = vmin.f32 %v264_v38, 1.0  ;;  %v273_v47 = vmin.f32 %v265_v39, 1.0  ;;  %v59_v11 = vmul.f32 0.6931472, %v538_v58  ;;  %v217_v13 = vadd.f32 %v216_v1, %v215_v3 }
  0x43   :  { %v286_v50 = vmul.f32 1.442695, %v278_v42  ;;  %v279_v51 = vmul.f32 4.8520303, %v271_v43  ;;  %319 = vst [vmem:[#allocation6 + $0x8] sm:$0xff] %v271_v43  ;;  %v125_v14 = vxor.u32 %v117_v8, %v99_v53  ;;  %v258_v15 = vadd.f32 %v250_v9, %v68_v4 }
  0x44   :  { %v280_v54 = vmul.f32 4.8520303, %v272_v46  ;;  %320 = vst [vmem:[#allocation6 + $0x10] sm:$0xff] %v272_v46  ;;  %v281_v55 = vmul.f32 4.8520303, %v273_v47  ;;  %321 = vst [vmem:[#allocation6 + $0x18] sm:$0xff] %v273_v47  ;;  %v172_v17 = vxor.u32 %v164_v10, %v156_v6 }
  0x45   :  { %396 = vpow2.f32 %v286_v50  ;;  %v288_v59 = vmul.f32 1.442695, %v279_v51  ;;  %v39_v18 = vmul.f32 127.0, %v31_v7  ;;  %v235_v19 = vmul.f32 5.9604645e-08, %v217_v13 }
  0x46   :  { %v290_v61 = vmul.f32 1.442695, %v280_v54  ;;  %v292_v62 = vmul.f32 1.442695, %v281_v55  ;;  %v133_v20 = vmul.u32 2246822507, %v125_v14 }
  0x47   :  { %398 = vpow2.f32 %v288_v59  ;;  %v266_v21 = vmax.f32 %v258_v15, 0.0  ;;  %v180_v22 = vshrl.u32 %v172_v17, 8  ;;  %v69_v23 = vmul.f32 0.20609929, %v59_v11 }
  0x48   :  { %400 = vpow2.f32 %v290_v61  ;;  %v368_v24 = vadd.f32 -0.5, %v235_v19  ;;  %v141_v25 = vshrl.u32 %v133_v20, 13  ;;  %v47_v12 = vadd.f32 1.0, %v39_v18 }
  0x49   :  { %402 = vpow2.f32 %v292_v62  ;;  %v274_v27 = vmin.f32 %v266_v21, 1.0  ;;  %v218_v28 = vshrl.u32 %v180_v22, 16  ;;  %v219_v29 = vand.u32 65535, %v180_v22 }
  0x4a   :  { %v251_v30 = vmul.f32 0.015625, %v368_v24  ;;  %v149_v31 = vxor.u32 %v141_v25, %v133_v20  ;;  %404 = vlog2.f32 %v47_v12  ;;  %v61_v48 = vmul.f32 0.6931472, %v540_v63 }
  0x4b   :  { %v282_v2 = vmul.f32 4.8520303, %v274_v27  ;;  %322 = vst [vmem:[#allocation6 + $0x20] sm:$0xff] %v274_v27  ;;  %v220_v33 = vcvt.s32.f32 %v218_v28  ;;  %v222_v34 = vcvt.s32.f32 %v219_v29 }
  0x4c   :  { %v259_v36 = vadd.f32 %v251_v30, %v69_v23  ;;  %v157_v37 = vmul.u32 3266489909, %v149_v31  ;;  %v70_v57 = vmul.f32 0.20609929, %v61_v48 }
  0x4d   :  { %v294_v41 = vmul.f32 1.442695, %v282_v2  ;;  %v221_v42 = vmul.f32 65536.0, %v220_v33 }
  0x4e   :  { %v267_v44 = vmax.f32 %v259_v36, 0.0  ;;  %v165_v45 = vshrl.u32 %v157_v37, 16 }
  0x4f   :  { %v397_v26 = vpop.eup %396  ;;  %406 = vpow2.f32 %v294_v41  ;;  %v223_v49 = vadd.f32 %v222_v34, %v221_v42 }
  0x50   :  { %v371_v58 = vadd.f32 -1.0, %v397_v26  ;;  %v275_v51 = vmin.f32 %v267_v44, 1.0  ;;  %v173_v52 = vxor.u32 %v165_v45, %v157_v37 }
  0x51   :  { %v399_v32 = vpop.eup %398  ;;  %v236_v54 = vmul.f32 5.9604645e-08, %v223_v49 }
  0x52   :  { %v401_v35 = vpop.eup %400  ;;  %v310_v38 = vmul.f32 0.007874016, %v371_v58  ;;  %v372_v39 = vadd.f32 -1.0, %v399_v32  ;;  %v283_v55 = vmul.f32 4.8520303, %v275_v51  ;;  %323 = vst [vmem:[#allocation6 + $0x28] sm:$0xff] %v275_v51 }
  0x53   :  { %v403_v40 = vpop.eup %402  ;;  %v373_v43 = vadd.f32 -1.0, %v401_v35  ;;  %v181_v56 = vshrl.u32 %v173_v52, 8  ;;  %v369_v59 = vadd.f32 -0.5, %v236_v54 }
  0x54   :  { %326 = vst [vmem:[#allocation5] sm:$0xff] %v310_v38  ;;  %v311_v46 = vmul.f32 0.007874016, %v372_v39  ;;  %v374_v47 = vadd.f32 -1.0, %v403_v40  ;;  %v296_v60 = vmul.f32 1.442695, %v283_v55  ;;  %v405_v1 = vpop.eup %404 }
  0x55   :  { %v312_v50 = vmul.f32 0.007874016, %v373_v43  ;;  %v224_v16 = vshrl.u32 %v181_v56, 16  ;;  %v225_v61 = vand.u32 65535, %v181_v56  ;;  %v252_v62 = vmul.f32 0.015625, %v369_v59 }
  0x56   :  { %327 = vst [vmem:[#allocation5 + $0x8] sm:$0xff] %v311_v46  ;;  %v313_v53 = vmul.f32 0.007874016, %v374_v47  ;;  %408 = vpow2.f32 %v296_v60  ;;  %v63_v7 = vmul.f32 0.6931472, %v405_v1 }
  0x57   :  { %328 = vst [vmem:[#allocation5 + $0x10] sm:$0xff] %v312_v50  ;;  %v226_v63 = vcvt.s32.f32 %v224_v16  ;;  %v228_v0 = vcvt.s32.f32 %v225_v61  ;;  %v260_v4 = vadd.f32 %v252_v62, %v70_v57 }
  0x58   :  { %329 = vst [vmem:[#allocation5 + $0x18] sm:$0xff] %v313_v53  ;;  %v71_v15 = vmul.f32 0.20609929, %v63_v7 }
  0x59   :  { %v227_v5 = vmul.f32 65536.0, %v226_v63  ;;  %v407_v6 = vpop.eup %406  ;;  %v268_v3 = vmax.f32 %v260_v4, 0.0 }
  0x5a   :  { %v375_v9 = vadd.f32 -1.0, %v407_v6 }
  0x5b   :  { %v229_v8 = vadd.f32 %v228_v0, %v227_v5  ;;  %v276_v10 = vmin.f32 %v268_v3, 1.0 }
  0x5c   :  { %v314_v13 = vmul.f32 0.007874016, %v375_v9 }
  0x5d   :  { %v237_v11 = vmul.f32 5.9604645e-08, %v229_v8  ;;  %v284_v14 = vmul.f32 4.8520303, %v276_v10  ;;  %324 = vst [vmem:[#allocation6 + $0x30] sm:$0xff] %v276_v10 }
  0x5e   :  { %330 = vst [vmem:[#allocation5 + $0x20] sm:$0xff] %v314_v13 }
  0x5f   :  { %v370_v17 = vadd.f32 -0.5, %v237_v11  ;;  %v298_v18 = vmul.f32 1.442695, %v284_v14 }
  0x60   :  { %v409_v19 = vpop.eup %408 }
  0x61   :  { %v253_v20 = vmul.f32 0.015625, %v370_v17  ;;  %410 = vpow2.f32 %v298_v18  ;;  %v376_v21 = vadd.f32 -1.0, %v409_v19 }
  0x63   :  { %v261_v22 = vadd.f32 %v253_v20, %v71_v15  ;;  %v315_v23 = vmul.f32 0.007874016, %v376_v21 }
  0x65   :  { %v269_v24 = vmax.f32 %v261_v22, 0.0  ;;  %331 = vst [vmem:[#allocation5 + $0x28] sm:$0xff] %v315_v23 }
  0x67   :  { %v277_v25 = vmin.f32 %v269_v24, 1.0 }
  0x69   :  { %v285_v26 = vmul.f32 4.8520303, %v277_v25  ;;  %325 = vst [vmem:[#allocation6 + $0x38] sm:$0xff] %v277_v25 }
  0x6a   :  { %447 = shalt.err (!%p444_p12)
}
  0x6b   :  { %s448_s25 = scalar_lea.hbm %s574_s2, 1024 }
  0x6c   :  { %p449_p13 = scmp.ne.s32.totalorder %s574_s2, %s448_s25  ;;  %p452_p0 = scmp.lt.u32.totalorder %s448_s25, %s574_s2 }
  0x6e   :  { %p454_p1 = pnand %p452_p0, %p449_p13 }
  0x70   :  { %457 = shalt.err (!%p454_p1)
}
  0x71   :  { %353 = dma.vmem_to_hbm [thread:$0]  %s351_s21, 1024, %s574_s2, [#allocation7]   ;;  %v300_v27 = vmul.f32 1.442695, %v285_v26  ;;  %v411_v28 = vpop.eup %410 }
  0x72   :  { %v377_v29 = vadd.f32 -1.0, %v411_v28  ;;  %s488_s4 = smov [#allocation5]  }
  0x73   :  { %412 = vpow2.f32 %v300_v27  ;;  %s340_s5 = sshll.u32 %s488_s4, 4  ;;  %s341_s5 = int_to_ptr.vmem [resolvable:$true] %s340_s5 }
  0x74   :  { %v316_v12 = vmul.f32 0.007874016, %v377_v29  ;;  %s458_s6 = scalar_lea.vmem %s341_s5, 1024  ;;  %p463_p3 = scmp.lt.s32.totalorder %s341_s5, %s341_s5 }
  0x75   :  { %p459_p2 = scmp.ne.s32.totalorder %s341_s5, %s458_s6  ;;  %p464_p4 = scmp.lt.s32.totalorder %s458_s6, %s458_s6 }
  0x76   :  { %332 = vst [vmem:[#allocation5 + $0x30] sm:$0xff] %v316_v12 }
  0x77   :  { %p465_p5 = por %p464_p4, %p463_p3 }
  0x79   :  { %p466_p6 = pnand %p465_p5, %p459_p2 }
  0x7d   :  { %v413_v30 = vpop.eup %412 }
  0x7e   :  { %v378_v31 = vadd.f32 -1.0, %v413_v30 }
  0x80   :  { %v317_v58 = vmul.f32 0.007874016, %v378_v31 }
  0x82   :  { %333 = vst [vmem:[#allocation5 + $0x38] sm:$0xff] %v317_v58 }
  0x83   :  { %469 = shalt.err (!%p466_p6)
}
  0x84   :  { %s470_s8 = scalar_lea.hbm %s573_s1, 1024 }
  0x85   :  { %p471_p7 = scmp.ne.s32.totalorder %s573_s1, %s470_s8  ;;  %p474_p8 = scmp.lt.u32.totalorder %s470_s8, %s573_s1 }
  0x87   :  { %p476_p9 = pnand %p474_p8, %p471_p7 }
  0x89   :  { %479 = shalt.err (!%p476_p9)
}
  0x8a   :  { %343 = dma.vmem_to_hbm [thread:$0]  %s341_s5, 1024, %s573_s1, [#allocation4]  }
  0x8b   :  { %482 = dma.done.wait [#allocation4], 1024  }
  0x8c   :  { %483 = vsyncadd [#allocation4], 4294966272 }
  0x8d   :  { %484 = dma.done.wait [#allocation7], 1024  }
  0x8e   :  { %485 = vsyncadd [#allocation7], 4294966272 }
  0x8f   :  { %360 = vsyncpa [#allocation3], 1 }
  0x90   :  { %361 = vsyncpa [#allocation4], 1 }
  0x91   :  { %362 = vsyncpa [#allocation7], 1 }

</bundles_post_ra>
